<compile_context>
chip_gen: v7x
topology: tpu7x:2x2x1
jax: 0.10.0
libtpu: 0.0.40
codegen_flags: <defaults>
</compile_context>

<pallas_src>
import functools

import jax
import jax.numpy as jnp
import numpy as np
from jax.experimental import pallas as pl
from jax.experimental.pallas import tpu as pltpu


# ----------------------------------------------------------------------------
# Pallas kernel: per grid step processes Bt batch elements.
#   ctrl_ref  : (Bt, D*M, N)        f32  control points, channel-stacked rows
#   wu_bd_ref : (Bt, D*U, D*M)      f32  block-diagonal Wu selection matrix
#   wvt_ref   : (Bt, N, V)          f32  WvT selection matrix
#   out_ref   : (Bt, D, U, V)       f32  evaluated surface (channel-major)
# ----------------------------------------------------------------------------
def _surf_kernel(ctrl_ref, wu_bd_ref, wvt_ref, out_ref):
    Bt = ctrl_ref.shape[0]
    D, U, V = out_ref.shape[1], out_ref.shape[2], out_ref.shape[3]
    for i in range(Bt):
        # (D*U, D*M) @ (D*M, N) -> (D*U, N): one MXU push for ALL channels.
        s = jnp.dot(wu_bd_ref[i], ctrl_ref[i], preferred_element_type=jnp.float32)
        # (D*U, N) @ (N, V) -> (D*U, V): one MXU push, lane-dense output.
        s = jnp.dot(s, wvt_ref[i], preferred_element_type=jnp.float32)
        for d in range(D):
            # Static sublane-aligned slices (U is a multiple of 8), lane-dense
            # (U, 128) stores.
            out_ref[i, d] = s[d * U:(d + 1) * U, :]


# ------------------------------- JAX glue ------------------------------------
def _normalize_knots(knot):
    c = jnp.cumsum(jnp.where(knot < 0.0, knot * 0 + 0.0001, knot), axis=1)
    return (c - c[:, 0:1]) / (c[:, -1:] - c[:, 0:1])


def _find_span(param, kn, deg):
    # param: (T,), kn: (B, K) -> (B, T) int32
    diff = param[None, None, :] - kn[:, deg:-deg][:, :, None]
    masked = jnp.where(diff > 1e-08, diff, diff * 0.0 + 1.0)
    return (jnp.argmin(masked, axis=1) + deg).astype(jnp.int32)


def _basis_funs(param, kn, span, deg):
    # Cox-de Boor recursion; mirrors the PyTorch loop exactly (forward values).
    u = param[None, :]                                   # (1, T)
    Ni = [u * 0.0 for _ in range(deg + 1)]
    Ni[0] = u * 0.0 + 1.0
    for k in range(1, deg + 1):
        saved = u * 0.0
        for r in range(k):
            l1 = jnp.take_along_axis(kn, span + r + 1, axis=1)        # (B, T)
            l2 = jnp.take_along_axis(kn, span + 1 - k + r, axis=1)    # (B, T)
            denom = l1 - u + (u - l2)
            temp = Ni[r] / denom
            temp = jnp.where(denom == 0.0, u * 0.0 + 0.0001, temp)
            Ni[r] = saved + (l1 - u) * temp
            saved = (u - l2) * temp
        Ni[k] = saved
    B, T = kn.shape[0], param.shape[0]
    return jnp.stack([jnp.broadcast_to(x, (B, T)) for x in Ni])       # (deg+1, B, T)


def _selection_matrix(basis, span, deg, num_ctrl):
    """W[b, t, c] = sum_l basis[l, b, t] * [span[b,t] - deg + l == c]."""
    cols = span[:, :, None] - deg + jnp.arange(deg + 1)[None, None, :]   # (B,T,deg+1)
    onehot = (cols[..., None] == jnp.arange(num_ctrl)[None, None, None, :])
    basis_t = jnp.transpose(basis, (1, 2, 0))                            # (B,T,deg+1)
    return jnp.sum(basis_t[..., None] * onehot.astype(jnp.float32), axis=2)  # (B,T,C)


def _pick_block_batch(B, per_item_bytes, max_bt=16, vmem_budget=8 << 20):
    """Largest divisor of B that fits the VMEM budget (double-buffered) while
    keeping the grid length >= 2 so both v7x TensorCores get work."""
    cap = max(1, min(max_bt, vmem_budget // max(2 * per_item_bytes, 1)))
    best = 1
    for cand in range(2, min(B // 2, cap) + 1):
        if B % cand == 0:
            best = cand
    return best


@functools.partial(jax.jit,
                   static_argnames=("p", "q", "out_dim_u", "out_dim_v", "dimension"))
def surfeval_forward(ctrl_pts, knot_u, knot_v, *, p=3, q=3,
                     out_dim_u=32, out_dim_v=128, dimension=3):
    B, M, N, _ = ctrl_pts.shape
    U, V = out_dim_u, out_dim_v
    D = dimension

    u = jnp.linspace(1e-05, 1.0 - 1e-05, U, dtype=jnp.float32)
    v = jnp.linspace(1e-05, 1.0 - 1e-05, V, dtype=jnp.float32)

    Uk = _normalize_knots(knot_u)
    Vk = _normalize_knots(knot_v)
    # TODO(synk): the torch.isnan debug prints in the reference module are host-side
    # diagnostics and are intentionally not reproduced.
    uspan = _find_span(u, Uk, p)                          # (B, U)
    vspan = _find_span(v, Vk, q)                          # (B, V)
    Nu = _basis_funs(u, Uk, uspan, p)                     # (p+1, B, U)
    Nv = _basis_funs(v, Vk, vspan, q)                     # (q+1, B, V)

    # Dense selection matrices (built once in XLA, fed to the kernel).
    wu = _selection_matrix(Nu, uspan, p, M)               # (B, U, M)
    wvt = jnp.transpose(_selection_matrix(Nv, vspan, q, N), (0, 2, 1))  # (B, N, V)

    # Block-diagonal Wu so one MXU push covers all `dimension` channels.
    eye = jnp.eye(D, dtype=jnp.float32)
    wu_bd = (eye[None, :, None, :, None] * wu[:, None, :, None, :]
             ).reshape(B, D * U, D * M)                   # (B, D*U, D*M)

    # Only the kept channels; channel-stacked row layout (B, D*M, N).
    ctrl_sel = ctrl_pts[..., :D].astype(jnp.float32)      # (B, M, N, D)
    ctrl_stacked = jnp.transpose(ctrl_sel, (0, 3, 1, 2)).reshape(B, D * M, N)

    per_item_bytes = 4 * (D * M * N + D * U * D * M + N * V + D * U * V)
    Bt = _pick_block_batch(B, per_item_bytes)
    grid = (B // Bt,)

    out = pl.pallas_call(
        _surf_kernel,
        out_shape=jax.ShapeDtypeStruct((B, D, U, V), jnp.float32),
        grid=grid,
        in_specs=[
            pl.BlockSpec((Bt, D * M, N), lambda b: (b, 0, 0)),
            pl.BlockSpec((Bt, D * U, D * M), lambda b: (b, 0, 0)),
            pl.BlockSpec((Bt, N, V), lambda b: (b, 0, 0)),
        ],
        out_specs=pl.BlockSpec((Bt, D, U, V), lambda b: (b, 0, 0, 0)),
        compiler_params=pltpu.CompilerParams(dimension_semantics=("parallel",)),
    )(ctrl_stacked, wu_bd, wvt)

    # Lane-dense kernel output -> PyTorch layout (B, U, V, dimension) in XLA.
    return jnp.transpose(out, (0, 2, 3, 1))


# Pure-JAX reference that mirrors the PyTorch forward literally (gather form).
def surfeval_reference(ctrl_pts, knot_u, knot_v, *, p=3, q=3,
                       out_dim_u=32, out_dim_v=128, dimension=3):
    B = ctrl_pts.shape[0]
    u = jnp.linspace(1e-05, 1.0 - 1e-05, out_dim_u, dtype=jnp.float32)
    v = jnp.linspace(1e-05, 1.0 - 1e-05, out_dim_v, dtype=jnp.float32)
    Uk = _normalize_knots(knot_u)
    Vk = _normalize_knots(knot_v)
    uspan = _find_span(u, Uk, p)
    vspan = _find_span(v, Vk, q)
    Nu = _basis_funs(u, Uk, uspan, p)
    Nv = _basis_funs(v, Vk, vspan, q)
    l_idx = uspan[:, None, :] - p + jnp.arange(p + 1)[None, :, None]   # (B, p+1, U)
    r_idx = vspan[:, None, :] - q + jnp.arange(q + 1)[None, :, None]   # (B, q+1, V)
    pts = ctrl_pts[jnp.arange(B)[:, None, None, None, None],
                   l_idx[:, :, None, :, None],
                   r_idx[:, None, :, None, :], :]                      # (B,p+1,q+1,U,V,D)
    Nu_uv = jnp.transpose(Nu, (1, 0, 2))[:, :, None, :, None, None]
    Nv_uv = jnp.transpose(Nv, (1, 0, 2))[:, None, :, None, :, None]
    surf = jnp.sum(Nu_uv * pts * Nv_uv, axis=(1, 2))
    return surf[:, :, :, :dimension]


if __name__ == "__main__":
    B, m, n = 2, 8, 8
    p = q = 3
    dimension = 3
    Dfull = dimension + 1                 # xyz + weight channel, like typical usage
    out_dim_u, out_dim_v = 32, 128        # module defaults

    key = jax.random.PRNGKey(0)
    k1, k2, k3 = jax.random.split(key, 3)
    ctrl_pts = jax.random.normal(k1, (B, m, n, Dfull), dtype=jnp.float32)

    def make_knot(kk, num_ctrl, deg, batch):
        # Clamped-knot-vector increments: zeros at both ends, positive interior.
        K = num_ctrl + deg + 1
        inc = jnp.zeros((batch, K), dtype=jnp.float32)
        interior = jax.random.uniform(kk, (batch, num_ctrl - deg),
                                      minval=0.1, maxval=1.0, dtype=jnp.float32)
        return inc.at[:, deg + 1:num_ctrl + 1].set(interior)

    knot_u = make_knot(k2, m, p, B)       # (B, m + p + 1)
    knot_v = make_knot(k3, n, q, B)       # (B, n + q + 1)

    surf = surfeval_forward(ctrl_pts, knot_u, knot_v, p=p, q=q,
                            out_dim_u=out_dim_u, out_dim_v=out_dim_v,
                            dimension=dimension)
    surf = jax.block_until_ready(surf)

    ref = surfeval_reference(ctrl_pts, knot_u, knot_v, p=p, q=q,
                             out_dim_u=out_dim_u, out_dim_v=out_dim_v,
                             dimension=dimension)
    assert surf.shape == (B, out_dim_u, out_dim_v, dimension)
    np.testing.assert_allclose(np.asarray(surf), np.asarray(ref),
                               rtol=1e-4, atol=1e-4)
    print("KERNEL_OK")
</pallas_src>

<mosaic_0001>
module attributes {stable_mosaic.version = 11 : i64} {
  func.func @_surf_kernel(%arg0: i32, %arg1: memref<1x24x8xf32, #tpu.memory_space<vmem>>, %arg2: memref<1x96x24xf32, #tpu.memory_space<vmem>>, %arg3: memref<1x8x128xf32, #tpu.memory_space<vmem>>, %arg4: memref<1x3x32x128xf32, #tpu.memory_space<vmem>>) attributes {dimension_semantics = [#tpu.dimension_semantics<parallel>], iteration_bounds = array<i64: 2>, scalar_prefetch = 0 : i64, scratch_operands = 0 : i64, tpu.core_type = #tpu.core_type<tc>, window_params = [{transform_indices = @transform_0, window_bounds = array<i64: 1, 24, 8>}, {transform_indices = @transform_1, window_bounds = array<i64: 1, 96, 24>}, {transform_indices = @transform_2, window_bounds = array<i64: 1, 8, 128>}, {transform_indices = @transform_3, window_bounds = array<i64: 1, 3, 32, 128>}]} {
    %c0 = arith.constant 0 : index
    %c0_0 = arith.constant 0 : index
    %c0_1 = arith.constant 0 : index
    %0 = vector.load %arg2[%c0, %c0_0, %c0_1] : memref<1x96x24xf32, #tpu.memory_space<vmem>>, vector<1x96x24xf32>
    %1 = vector.shape_cast %0 : vector<1x96x24xf32> to vector<96x24xf32>
    %c0_2 = arith.constant 0 : index
    %c0_3 = arith.constant 0 : index
    %c0_4 = arith.constant 0 : index
    %2 = vector.load %arg1[%c0_2, %c0_3, %c0_4] : memref<1x24x8xf32, #tpu.memory_space<vmem>>, vector<1x24x8xf32>
    %3 = vector.shape_cast %2 : vector<1x24x8xf32> to vector<24x8xf32>
    %cst = arith.constant dense<0.000000e+00> : vector<96x8xf32>
    %4 = tpu.matmul %1, %3, %cst {dimension_numbers = #tpu.dot_dimension_numbers<[1], [0], [0], [1], [0, 0, 1, 1], [], []>} : vector<96x24xf32>, vector<24x8xf32>, vector<96x8xf32> -> vector<96x8xf32>
    %c0_5 = arith.constant 0 : index
    %c0_6 = arith.constant 0 : index
    %c0_7 = arith.constant 0 : index
    %5 = vector.load %arg3[%c0_5, %c0_6, %c0_7] : memref<1x8x128xf32, #tpu.memory_space<vmem>>, vector<1x8x128xf32>
    %6 = vector.shape_cast %5 : vector<1x8x128xf32> to vector<8x128xf32>
    %cst_8 = arith.constant dense<0.000000e+00> : vector<96x128xf32>
    %7 = tpu.matmul %4, %6, %cst_8 {dimension_numbers = #tpu.dot_dimension_numbers<[1], [0], [0], [1], [0, 0, 1, 1], [], []>} : vector<96x8xf32>, vector<8x128xf32>, vector<96x128xf32> -> vector<96x128xf32>
    %8 = vector.extract_strided_slice %7 {offsets = [0, 0], sizes = [32, 128], strides = [1, 1]} : vector<96x128xf32> to vector<32x128xf32>
    %c0_9 = arith.constant 0 : index
    %c0_10 = arith.constant 0 : index
    %c0_11 = arith.constant 0 : index
    %c0_12 = arith.constant 0 : index
    %9 = vector.load %arg4[%c0_9, %c0_10, %c0_11, %c0_12] : memref<1x3x32x128xf32, #tpu.memory_space<vmem>>, vector<1x1x32x128xf32>
    %10 = vector.shape_cast %9 : vector<1x1x32x128xf32> to vector<32x128xf32>
    %11 = vector.shape_cast %8 : vector<32x128xf32> to vector<1x1x32x128xf32>
    tpu.vector_store %arg4[%c0_9, %c0_10, %c0_11, %c0_12], %11 {strides = array<i32>} : memref<1x3x32x128xf32, #tpu.memory_space<vmem>>, vector<1x1x32x128xf32>,
    %12 = vector.extract_strided_slice %7 {offsets = [32, 0], sizes = [32, 128], strides = [1, 1]} : vector<96x128xf32> to vector<32x128xf32>
    %c0_13 = arith.constant 0 : index
    %c1 = arith.constant 1 : index
    %c0_14 = arith.constant 0 : index
    %c0_15 = arith.constant 0 : index
    %13 = vector.load %arg4[%c0_13, %c1, %c0_14, %c0_15] : memref<1x3x32x128xf32, #tpu.memory_space<vmem>>, vector<1x1x32x128xf32>
    %14 = vector.shape_cast %13 : vector<1x1x32x128xf32> to vector<32x128xf32>
    %15 = vector.shape_cast %12 : vector<32x128xf32> to vector<1x1x32x128xf32>
    tpu.vector_store %arg4[%c0_13, %c1, %c0_14, %c0_15], %15 {strides = array<i32>} : memref<1x3x32x128xf32, #tpu.memory_space<vmem>>, vector<1x1x32x128xf32>,
    %16 = vector.extract_strided_slice %7 {offsets = [64, 0], sizes = [32, 128], strides = [1, 1]} : vector<96x128xf32> to vector<32x128xf32>
    %c0_16 = arith.constant 0 : index
    %c2 = arith.constant 2 : index
    %c0_17 = arith.constant 0 : index
    %c0_18 = arith.constant 0 : index
    %17 = vector.load %arg4[%c0_16, %c2, %c0_17, %c0_18] : memref<1x3x32x128xf32, #tpu.memory_space<vmem>>, vector<1x1x32x128xf32>
    %18 = vector.shape_cast %17 : vector<1x1x32x128xf32> to vector<32x128xf32>
    %19 = vector.shape_cast %16 : vector<32x128xf32> to vector<1x1x32x128xf32>
    tpu.vector_store %arg4[%c0_16, %c2, %c0_17, %c0_18], %19 {strides = array<i32>} : memref<1x3x32x128xf32, #tpu.memory_space<vmem>>, vector<1x1x32x128xf32>,
    return
  }
  func.func @transform_0(%arg0: i32) -> (i32, i32, i32) {
    %c0_i32 = arith.constant 0 : i32
    %c0_i32_0 = arith.constant 0 : i32
    %c0_i32_1 = arith.constant 0 : i32
    return %arg0, %c0_i32, %c0_i32_0 : i32, i32, i32
  }
  func.func @transform_1(%arg0: i32) -> (i32, i32, i32) {
    %c0_i32 = arith.constant 0 : i32
    %c0_i32_0 = arith.constant 0 : i32
    %c0_i32_1 = arith.constant 0 : i32
    return %arg0, %c0_i32, %c0_i32_0 : i32, i32, i32
  }
  func.func @transform_2(%arg0: i32) -> (i32, i32, i32) {
    %c0_i32 = arith.constant 0 : i32
    %c0_i32_0 = arith.constant 0 : i32
    %c0_i32_1 = arith.constant 0 : i32
    return %arg0, %c0_i32, %c0_i32_0 : i32, i32, i32
  }
  func.func @transform_3(%arg0: i32) -> (i32, i32, i32, i32) {
    %c0_i32 = arith.constant 0 : i32
    %c0_i32_0 = arith.constant 0 : i32
    %c0_i32_1 = arith.constant 0 : i32
    %c0_i32_2 = arith.constant 0 : i32
    return %arg0, %c0_i32, %c0_i32_0, %c0_i32_1 : i32, i32, i32, i32
  }
}

</mosaic_0001>

<bundles_post_ra>
// kernel: surfeval_forward.1
= control target key start
LH: loop header
LB: loop body
LE: loop exit
PB: predicated region body
PF: predicated region fallthrough
CT: control target
= control target key end

     0   :  { %8 = vsyncpa [#allocation3], 0  ;;  %s1066_s0 = inlined_call_operand.vmem [shape: f32[2,24,8], index: 0, kind: input, shape index: {}]   ;;  %s1067_s1 = inlined_call_operand.vmem [shape: f32[2,96,24], index: 1, kind: input, shape index: {}]   ;;  %s1068_s2 = inlined_call_operand.vmem [shape: f32[2,8,128], index: 2, kind: input, shape index: {}]   ;;  %s1069_s3 = inlined_call_operand.hbm [shape: f32[2,3,32,128], index: 3, kind: output, shape index: {}]  }
   0x1   :  { %10 = vsyncpa [#allocation3 + $0x1], 0  ;;  %s910_s12 = smov 0   ;;  %s912_s13 = smov 0  }
   0x2   :  { %s914_s14 = smov 0   ;;  %s916_s15 = smov 0  }
   0x3 LB: > { %s931_s16 = sadd.s32 4294967295, %s885_s15   ;;  %s660_s17 = sadd.s32 4294967294, %s885_s15   ;;  %s885_s15 = sphi %s916_s15, %s1075_s15   ;;  %s881_s14 = sphi %s914_s14, %s1074_s14   ;;  %s877_s13 = sphi %s912_s13, %s1073_s13   ;;  %s873_s12 = sphi %s910_s12, %s1072_s12  }
   0x4   : > { %s935_s18 = sadd.s32 1, %s885_s15   ;;  %s101_s19 = sadd.s32 1, %s881_s14 }
   0x5   : > { %s98_s20 = ssub.s32 %s885_s15, %s935_s18  ;;  %p111_p0 = scmp.ne.s32.totalorder %s881_s14, %s877_s13 }
   0x6   : > { %p99_p1 = scmp.eq.s32.totalorder %s98_s20, 0  ;;  %p112_p2 = scmp.eq.s32.totalorder %s931_s16, 1 }
   0x7   : > { %p117_p3 = scmp.ne.s32.totalorder %s877_s13, %s873_s12  ;;  %p118_p4 = scmp.eq.s32.totalorder %s660_s17, 1 }
   0x8   : > { %s946_s21 = scalar_select %p99_p1, %s881_s14, %s101_s19  }
   0x9   : > { %p948_p5 = por %p112_p2, %p111_p0  ;;  %p952_p6 = por %p118_p4, %p117_p3 }
   0xa   : > { %p663_p7 = scmp.ge.s32.totalorder %s885_s15, 1  ;;  %p159_p8 = scmp.lt.s32.totalorder %s885_s15, 3 }
   0xc   : > { %p160_p9 = pnand %p663_p7, %p159_p8 }
   0xd   : > { %p192_p10 = scmp.lt.s32.totalorder (!%p160_p9), %s931_s16, 1  ;;  %vm221_vm0 = vcmask (!%p160_p9), 195584   ;;  %vm384_vm1 = vcmask (!%p160_p9), 64512   ;;  %s189_s10 = sand.u32 (!%p160_p9), 1, %s877_s13  }
   0xe   : > { %163 = sbr.rel (%p160_p9) target bundleno = 497 (0x1f1), region = 32  ;;  %s887_s28 = smov (!%p160_p9), [#allocation2]  }
   0xf   : > { %s778_s11 = smul.u32 (!%p160_p9), 96, %s189_s10 }
  0x10   : > { %s781_s19 = smul.u32 (!%p160_p9), 1536, %s931_s16 }
  0x11   : > { %s191_s17 = scalar_lea.vmem (!%p160_p9), [#allocation2], %s778_s11 }
  0x12   : > { %s574_s20 = sshll.u32 (!%p160_p9), %s191_s17, 4  ;;  %s1021_s20 = int_to_ptr.vmem [resolvable:$true] %s574_s20 }
  0x13   : > { %s823_s27 = scalar_lea.vmem (!%p160_p9), %s1021_s20, 1536 }
  0x14   : > { %p824_p11 = scmp.ne.s32.totalorder (!%p160_p9), %s1021_s20, %s823_s27 }
  0x15   : > { %s960_s24 = scalar_select %p192_p10, %s931_s16, 1 }
  0x16   : > { %s1025_s16 = scalar_lea.sflag [#allocation3], %s189_s10  ;;  %p825_p12 = pnand %p824_p11, %p948_p5 }
  0x17   : > { %s779_s25 = smul.u32 24, %s960_s24  ;;  %s666_s6 = sshll.u32 %s960_s24, 3 }
  0x18   : > { %s780_s26 = smul.u32 96, %s960_s24  ;;  %s205_s9 = scalar_lea.vmem %s1068_s2, %s666_s6 }
  0x19   : > { %s196_s29 = scalar_lea.vmem %s1066_s0, %s779_s25  ;;  %v383_v16 = vld [vmem:[%s205_s9] sm:$0xff]  ;;  %p826_p13 = pneg %p825_p12 }
  0x1a   : > { %s970_s5 = scalar_lea.vmem %s1067_s1, %s780_s26  ;;  %v218_v0 = vld [vmem:[%s196_s29] sm:$0xff]  ;;  %v219_v1 = vld [vmem:[%s196_s29 + $0x8] sm:$0xff]  ;;  %v220_v4 = vld [vmem:[%s196_s29 + $0x10] sm:$0xff]  ;;  %754 = vmatprep.subr.mxu1 %v383_v16  ;;  %s1019_s26 = scalar_lea.hbm %s1069_s3, %s781_s19 }
  0x1b   : > { %v774_v2 = vpack.c.bf16 %v219_v1, %v218_v0  ;;  %v206_v3 = vld [vmem:[%s970_s5] sm:$0xff]  ;;  %v207_v5 = vld [vmem:[%s970_s5 + $0x8] sm:$0xff]  ;;  %v208_v6 = vld [vmem:[%s970_s5 + $0x10] sm:$0xff]  ;;  %755 = vmatpush3.msra.mxu1 %v383_v16  ;;  %s827_s29 = sshll.u32 %s887_s28, 4  ;;  %s828_s29 = int_to_ptr.vmem [resolvable:$false] %s827_s29 }
  0x1c   : > { %736 = vmatprep.mubr.msk.f32.mxu0 %vm221_vm0, %v206_v3  ;;  %v209_v7 = vld [vmem:[%s970_s5 + $0x18] sm:$0xff]  ;;  %v210_v8 = vld [vmem:[%s970_s5 + $0x20] sm:$0xff]  ;;  %v211_v9 = vld [vmem:[%s970_s5 + $0x28] sm:$0xff]  ;;  %s829_s30 = scalar_lea.vmem %s828_s29, 3072  ;;  %p830_p0 = scmp.lt.s32.totalorder %s1021_s20, %s828_s29 }
  0x1d   : > { %775 = vmatprep.subr.bf16.mxu0 %v774_v2  ;;  %v212_v10 = vld [vmem:[%s970_s5 + $0x30] sm:$0xff]  ;;  %v213_v11 = vld [vmem:[%s970_s5 + $0x38] sm:$0xff]  ;;  %v214_v12 = vld [vmem:[%s970_s5 + $0x40] sm:$0xff]  ;;  %p831_p1 = scmp.lt.s32.totalorder %s829_s30, %s823_s27 }
  0x1e   : > { %777 = vmatpush3.bf16.msra.mxu0 %v774_v2  ;;  %v215_v13 = vld [vmem:[%s970_s5 + $0x48] sm:$0xff]  ;;  %v216_v14 = vld [vmem:[%s970_s5 + $0x50] sm:$0xff]  ;;  %v217_v15 = vld [vmem:[%s970_s5 + $0x58] sm:$0xff] }
  0x1f   : > { %734 = vmatprep.subr.mxu0 %v220_v4  ;;  %p832_p2 = por %p831_p1, %p830_p0 }
  0x21   : > { %p833_p3 = pnand %p832_p2, %p826_p13 }
  0x22   : > { %735 = vmatpush3.msra.mxu0 %v220_v4 }
  0x23   : > { %737 = vmatmul.mubr.msk.f32.vlgmr.msra.gmra.mrb[0].mxu0 %vm221_vm0, %v207_v5 }
  0x24   : > { %739 = vmatprep.mubr.msk.f32.mxu0 %vm221_vm0, %v208_v6 }
  0x27   : > { %740 = vmatmul.mubr.msk.f32.gmra.mrb[2].mxu0 %vm221_vm0, %v209_v7 }
  0x28   : > { %742 = vmatprep.mubr.msk.f32.mxu0 %vm221_vm0, %v210_v8 }
  0x2b   : > { %743 = vmatmul.mubr.msk.f32.gmra.mrb[4].mxu0 %vm221_vm0, %v211_v9 }
  0x2c   : > { %745 = vmatprep.mubr.msk.f32.mxu0 %vm221_vm0, %v212_v10 }
  0x2f   : > { %746 = vmatmul.mubr.msk.f32.gmra.mrb[6].mxu0 %vm221_vm0, %v213_v11 }
  0x30   : > { %748 = vmatprep.mubr.msk.f32.mxu0 %vm221_vm0, %v214_v12 }
  0x33   : > { %749 = vmatmul.mubr.msk.f32.gmra.mrb[8].mxu0 %vm221_vm0, %v215_v13 }
  0x34   : > { %751 = vmatprep.mubr.msk.f32.mxu0 %vm221_vm0, %v216_v14 }
  0x37   : > { %752 = vmatmul.mubr.msk.f32.gmra.mrb[10].mxu0 %vm221_vm0, %v217_v15 }
  0xf6   : > { %v738_v17 = vpop.f32.mrb[0].mxu0 }
  0xf7   : > { %v324_v18 = vpop.f32.mrb[1].mxu0 }
  0xf8   : > { %756 = vmatprep.mubr.msk.f32.mxu1 %vm384_vm1, %v324_v18 }
  0xf9   : > { %757 = vmatmul.mubr.msk.f32.vlgmr.msra.gmra.mrb[0].mxu1 %vm384_vm1, %v738_v17 }
  0xfa   : > { %v741_v19 = vpop.f32.mrb[2].mxu0 }
  0xfb   : > { %v334_v20 = vpop.f32.mrb[3].mxu0 }
  0xfc   : > { %759 = vmatprep.mubr.msk.f32.mxu1 %vm384_vm1, %v334_v20 }
  0xfd   : > { %760 = vmatmul.mubr.msk.f32.gmra.mrb[2].mxu1 %vm384_vm1, %v741_v19 }
  0xfe   : > { %v744_v21 = vpop.f32.mrb[4].mxu0 }
  0xff   : > { %v344_v22 = vpop.f32.mrb[5].mxu0 }
 0x100   : > { %762 = vmatprep.mubr.msk.f32.mxu1 %vm384_vm1, %v344_v22 }
 0x101   : > { %763 = vmatmul.mubr.msk.f32.gmra.mrb[4].mxu1 %vm384_vm1, %v744_v21 }
 0x102   : > { %v747_v23 = vpop.f32.mrb[6].mxu0 }
 0x103   : > { %v354_v24 = vpop.f32.mrb[7].mxu0 }
 0x104   : > { %765 = vmatprep.mubr.msk.f32.mxu1 %vm384_vm1, %v354_v24 }
 0x105   : > { %766 = vmatmul.mubr.msk.f32.gmra.mrb[6].mxu1 %vm384_vm1, %v747_v23 }
 0x106   : > { %v750_v25 = vpop.f32.mrb[8].mxu0 }
 0x107   : > { %v364_v26 = vpop.f32.mrb[9].mxu0 }
 0x108   : > { %768 = vmatprep.mubr.msk.f32.mxu1 %vm384_vm1, %v364_v26 }
 0x109   : > { %769 = vmatmul.mubr.msk.f32.gmra.mrb[8].mxu1 %vm384_vm1, %v750_v25 }
 0x10a   : > { %v753_v27 = vpop.f32.mrb[10].mxu0 }
 0x10b   : > { %v374_v28 = vpop.f32.mrb[11].mxu0 }
 0x10c   : > { %771 = vmatprep.mubr.msk.f32.mxu1 %vm384_vm1, %v374_v28 }
 0x10d   : > { %772 = vmatmul.mubr.msk.f32.gmra.mrb[10].mxu1 %vm384_vm1, %v753_v27 }
 0x1cc   : > { %v758_v29 = vpop.f32.mrb[0].mxu1 }
 0x1cd   : > { %547 = vst [vmem:[%s191_s17 + $0x8] sm:$0xff] %v758_v29  ;;  %v487_v30 = vpop.f32.mrb[1].mxu1 }
 0x1ce   : > { %546 = vst [vmem:[%s191_s17] sm:$0xff] %v487_v30 }
 0x1d0   : > { %v761_v31 = vpop.f32.mrb[2].mxu1 }
 0x1d1   : > { %549 = vst [vmem:[%s191_s17 + $0x18] sm:$0xff] %v761_v31  ;;  %v497_v32 = vpop.f32.mrb[3].mxu1 }
 0x1d2   : > { %548 = vst [vmem:[%s191_s17 + $0x10] sm:$0xff] %v497_v32 }
 0x1d4   : > { %v764_v33 = vpop.f32.mrb[4].mxu1 }
 0x1d5   : > { %692 = vst [vmem:[%s191_s17 + $0x28] sm:$0xff] %v764_v33  ;;  %v507_v34 = vpop.f32.mrb[5].mxu1 }
 0x1d6   : > { %691 = vst [vmem:[%s191_s17 + $0x20] sm:$0xff] %v507_v34 }
 0x1d8   : > { %v767_v35 = vpop.f32.mrb[6].mxu1 }
 0x1d9   : > { %694 = vst [vmem:[%s191_s17 + $0x38] sm:$0xff] %v767_v35  ;;  %v517_v36 = vpop.f32.mrb[7].mxu1 }
 0x1da   : > { %693 = vst [vmem:[%s191_s17 + $0x30] sm:$0xff] %v517_v36 }
 0x1dc   : > { %v770_v37 = vpop.f32.mrb[8].mxu1 }
 0x1dd   : > { %696 = vst [vmem:[%s191_s17 + $0x48] sm:$0xff] %v770_v37  ;;  %v527_v38 = vpop.f32.mrb[9].mxu1 }
 0x1de   : > { %695 = vst [vmem:[%s191_s17 + $0x40] sm:$0xff] %v527_v38 }
 0x1e0   : > { %v773_v39 = vpop.f32.mrb[10].mxu1 }
 0x1e1   : > { %698 = vst [vmem:[%s191_s17 + $0x58] sm:$0xff] %v773_v39  ;;  %v537_v40 = vpop.f32.mrb[11].mxu1 }
 0x1e2   : > { %697 = vst [vmem:[%s191_s17 + $0x50] sm:$0xff] %v537_v40 }
 0x1e3   : > { %836 = shalt.err (!%p833_p3)
}
 0x1e4   : > { %s837_s4 = scalar_lea.hbm %s1019_s26, 1536  ;;  %s841_s7 = scalar_lea.hbm %s1069_s3, 3072 }
 0x1e5   : > { %p838_p4 = scmp.ne.s32.totalorder %s1019_s26, %s837_s4  ;;  %p842_p9 = scmp.lt.u32.totalorder %s1019_s26, %s1069_s3 }
 0x1e6   : > { %p843_p10 = scmp.lt.u32.totalorder %s841_s7, %s837_s4  ;;  %p845_p12 = scmp.lt.u32.totalorder %s837_s4, %s1019_s26 }
 0x1e7   : > { %p839_p7 = pnand %p838_p4, %p948_p5 }
 0x1e8   : > { %p844_p11 = por %p843_p10, %p842_p9 }
 0x1e9   : > { %p840_p8 = pneg %p839_p7 }
 0x1ea   : > { %p846_p13 = por %p845_p12, %p844_p11 }
 0x1ec   : > { %p847_p0 = pnand %p846_p13, %p840_p8 }
 0x1ee   : > { %850 = shalt.err (!%p847_p0)
}
 0x1ef   : > { %s888_s10 = smov 128   ;;  %s889_s11 = smov 8  }
 0x1f0   : > { %782 = dma.vmem_to_hbm [thread:$0]  (%p948_p5), %s1021_s20, 1536, %s1019_s26, %s1025_s16, %s888_s10, %s888_s10, %s889_s11  }
 0x1f1 PF: > { %p788_p1 = scmp.ge.s32.totalorder %s885_s15, 2  ;;  %s589_s17 = sand.u32 1, %s873_s12  }
 0x1f2   : > { %s590_s19 = scalar_lea.sflag [#allocation3], %s589_s17 }
 0x1f3   : > { %p785_p2 = pnand %p788_p1, %p952_p6 }
 0x1f5   : > { %868 = dma.done.wait (!%p785_p2), %s590_s19, 1536  }
 0x1f6   : > { %870 = vsyncadd (!%p785_p2), %s590_s19, 4294965760  ;;  %p13_p3 = scmp.ge.s32.totalorder %s935_s18, 4   ;;  %s1072_s12 = smov %s877_s13 }
 0x1f7   : > { %s1073_s13 = smov %s881_s14  ;;  %s1074_s14 = smov %s946_s21 }
 0x1f8   : > { %s1075_s15 = smov %s935_s18  ;;  %15 = sbr.rel (!%p13_p3) target bundleno = 3 (0x3), region = 75 }
 0x1ff   :  { %595 = vsyncpa [#allocation3], 1 }
 0x200   :  { %597 = vsyncpa [#allocation3 + $0x1], 1 }

</bundles_post_ra>
